<compile_context>
chip_gen: v7x
topology: tpu7x:2x2x1
jax: 0.10.0
libtpu: 0.0.40
codegen_flags: <defaults>
</compile_context>

<pallas_src>
import jax
import jax.numpy as jnp
from jax.experimental import pallas as pl
from jax.experimental.pallas import tpu as pltpu


def _round_up(n, m):
    return ((n + m - 1) // m) * m


def _pick_chunk(t, max_chunk):
    """Largest divisor of t that is <= max_chunk (time-chunk size)."""
    tc = min(t, max_chunk)
    while t % tc != 0:
        tc -= 1
    return tc


# Gate order inside the kernel: [i, f, o, g]; PyTorch stacks them as [i, f, g, o].
_GATE_PERM = (0, 1, 3, 2)


def _lstm_recurrence_kernel(xw_ref, w_hh_ref, w_fc_ref, b_fc_ref,
                            out_ref, h_sc, c_sc):
    """One time-chunk of the recurrence.

    xw_ref : (Tc, Bp, 4*Hp)  streamed pre-activations x@W_ih^T + b (gate-padded, bf16/f32)
    w_hh_ref : (Hp, 4*Hp)    recurrent weight, gate-padded
    w_fc_ref : (Hp, Op), b_fc_ref : (1, Op)
    out_ref : (Bp, Op)       final FC output (written on the last grid step only)
    h_sc, c_sc : (Bp, Hp) f32 state carried across grid steps
    """
    Tc = xw_ref.shape[0]
    Hp = h_sc.shape[1]

    @pl.when(pl.program_id(0) == 0)
    def _():
        h_sc[...] = jnp.zeros_like(h_sc)
        c_sc[...] = jnp.zeros_like(c_sc)

    def step(t, carry):
        h, c = carry                                   # f32 vreg-resident state
        gates = (xw_ref[t].astype(jnp.float32)
                 + jnp.dot(h.astype(w_hh_ref.dtype), w_hh_ref[...],
                           preferred_element_type=jnp.float32))   # (Bp, 4Hp)
        # Padded gate layout [i | f | o | g]: one contiguous sigmoid slice + one tanh.
        ifo = jax.nn.sigmoid(gates[:, 0:3 * Hp])
        g_g = jnp.tanh(gates[:, 3 * Hp:4 * Hp])
        i_g = ifo[:, 0 * Hp:1 * Hp]
        f_g = ifo[:, 1 * Hp:2 * Hp]
        o_g = ifo[:, 2 * Hp:3 * Hp]
        c_new = f_g * c + i_g * g_g
        h_new = o_g * jnp.tanh(c_new)
        return (h_new, c_new)

    h, c = jax.lax.fori_loop(0, Tc, step, (h_sc[...], c_sc[...]), unroll=4)

    # Persist state for the next time-chunk.
    h_sc[...] = h
    c_sc[...] = c

    # FC head on the final hidden state (Op padded to 128 -> unmasked stores).
    @pl.when(pl.program_id(0) == pl.num_programs(0) - 1)
    def _():
        out_ref[...] = (jnp.dot(h.astype(w_fc_ref.dtype), w_fc_ref[...],
                                preferred_element_type=jnp.float32)
                        + b_fc_ref[...]).astype(out_ref.dtype)


def lstm_model_forward(x, params, *, matmul_dtype=jnp.bfloat16, max_t_chunk=64):
    """x: (B, T, D) float32 (batch_first, like the PyTorch module). Returns (B, O)."""
    B, T, D = x.shape
    H = params["w_hh"].shape[1]
    O = params["w_fc"].shape[0]
    f32 = jnp.float32

    Bp = _round_up(B, 8)       # sublane multiple (f32)
    Hp = _round_up(H, 128)     # lane multiples
    Op = _round_up(O, 128)
    Tc = _pick_chunk(T, max_t_chunk)
    num_chunks = T // Tc

    perm = jnp.asarray(_GATE_PERM)

    def pad_gate_rows(w):
        # (4H, K) PyTorch gate-stacked weight -> (4Hp, K): per-gate Hp-wide slots,
        # gates reordered to [i, f, o, g]; padded rows are exactly zero.
        K = w.shape[1]
        w4 = w.reshape(4, H, K)[perm]
        return jnp.zeros((4, Hp, K), f32).at[:, :H, :].set(w4).reshape(4 * Hp, K)

    # ---- Hoisted input projection as a plain XLA matmul (unpadded D, bf16 operands,
    #      f32 accumulation), then gate-reorder + pad + time-major for streaming.
    b4h = (params["b_ih"] + params["b_hh"]).astype(f32)                       # (4H,)
    xw = jnp.einsum("btd,gd->btg",
                    x.astype(matmul_dtype), params["w_ih"].astype(matmul_dtype),
                    preferred_element_type=f32) + b4h                          # (B, T, 4H)
    xw = xw.reshape(B, T, 4, H)[:, :, perm, :]                                 # [i,f,o,g]
    xw_p = (jnp.zeros((T, Bp, 4, Hp), f32)
            .at[:, :B, :, :H].set(jnp.transpose(xw, (1, 0, 2, 3)))
            .reshape(T, Bp, 4 * Hp)
            .astype(matmul_dtype))                                             # streamed bf16

    # ---- Weights (gate-padded, lane-aligned), padded rows/cols exactly zero.
    w_hh_p = (jnp.zeros((Hp, 4 * Hp), f32)
              .at[:H, :].set(pad_gate_rows(params["w_hh"]).T)
              .astype(matmul_dtype))
    w_fc_p = (jnp.zeros((Hp, Op), f32)
              .at[:H, :O].set(params["w_fc"].T)
              .astype(matmul_dtype))
    b_fc_p = jnp.zeros((1, Op), f32).at[0, :O].set(params["b_fc"])

    # ---- Explicit VMEM budget for this tiling (bounded independent of T).
    itemsize = jnp.dtype(matmul_dtype).itemsize
    vmem_bytes = (2 * Tc * Bp * 4 * Hp * itemsize        # streamed xw chunk (double-buffered)
                  + 2 * Hp * 4 * Hp * itemsize           # W_hh^T
                  + 2 * Hp * Op * itemsize               # W_fc^T
                  + 2 * Op * 4                           # b_fc
                  + 2 * Bp * Hp * 4                      # h, c scratch
                  + 2 * Bp * Op * 4)                     # output block
    vmem_limit = min(vmem_bytes + (4 << 20), 48 << 20)   # headroom, below v7x 64 MiB

    grid_spec = pltpu.PrefetchScalarGridSpec(
        num_scalar_prefetch=0,
        grid=(num_chunks,),                               # serial time-chunk axis
        in_specs=[
            pl.BlockSpec((Tc, Bp, 4 * Hp), lambda i: (i, 0, 0)),   # streamed xw chunk
            pl.BlockSpec((Hp, 4 * Hp), lambda i: (0, 0)),          # W_hh^T (gate-padded)
            pl.BlockSpec((Hp, Op), lambda i: (0, 0)),              # W_fc^T
            pl.BlockSpec((1, Op), lambda i: (0, 0)),               # b_fc
        ],
        out_specs=pl.BlockSpec((Bp, Op), lambda i: (0, 0)),
        scratch_shapes=[
            pltpu.VMEM((Bp, Hp), jnp.float32),                     # h (across chunks)
            pltpu.VMEM((Bp, Hp), jnp.float32),                     # c (across chunks)
        ],
    )

    out_p = pl.pallas_call(
        _lstm_recurrence_kernel,
        out_shape=jax.ShapeDtypeStruct((Bp, Op), jnp.float32),
        grid_spec=grid_spec,
        compiler_params=pltpu.CompilerParams(
            dimension_semantics=("arbitrary",),           # recurrence is serial in time
            vmem_limit_bytes=int(vmem_limit)),
    )(xw_p, w_hh_p, w_fc_p, b_fc_p)

    return out_p[:B, :O]


def _reference_forward(x, params):
    """Pure-JAX reference replicating nn.LSTM(batch_first) + nn.Linear."""
    B, T, D = x.shape
    H = params["w_hh"].shape[1]

    def step(carry, x_t):
        h, c = carry
        gates = (x_t @ params["w_ih"].T + params["b_ih"]
                 + h @ params["w_hh"].T + params["b_hh"])
        i, f, g, o = jnp.split(gates, 4, axis=-1)
        i, f, o = jax.nn.sigmoid(i), jax.nn.sigmoid(f), jax.nn.sigmoid(o)
        g = jnp.tanh(g)
        c = f * c + i * g
        h = o * jnp.tanh(c)
        return (h, c), None

    h0 = jnp.zeros((B, H), jnp.float32)
    c0 = jnp.zeros((B, H), jnp.float32)
    (hT, _), _ = jax.lax.scan(step, (h0, c0), jnp.transpose(x, (1, 0, 2)))
    return hT @ params["w_fc"].T + params["b_fc"]


def init_params(key, input_dim, hidden_dim, output_dim):
    """Deterministic init mimicking PyTorch's uniform(-1/sqrt(H), 1/sqrt(H))."""
    ks = jax.random.split(key, 6)
    s = 1.0 / jnp.sqrt(hidden_dim)
    u = lambda k, shape: jax.random.uniform(k, shape, jnp.float32, -s, s)
    return {
        "w_ih": u(ks[0], (4 * hidden_dim, input_dim)),
        "w_hh": u(ks[1], (4 * hidden_dim, hidden_dim)),
        "b_ih": u(ks[2], (4 * hidden_dim,)),
        "b_hh": u(ks[3], (4 * hidden_dim,)),
        "w_fc": u(ks[4], (output_dim, hidden_dim)),
        "b_fc": u(ks[5], (output_dim,)),
    }


if __name__ == "__main__":
    input_dim, hidden_dim, output_dim = 28, 100, 10
    B, T = 2, 8

    key = jax.random.PRNGKey(0)
    kx, kp = jax.random.split(key)
    x = jax.random.normal(kx, (B, T, input_dim), jnp.float32)
    params = init_params(kp, input_dim, hidden_dim, output_dim)

    ref = jax.block_until_ready(_reference_forward(x, params))

    # f32 matmul path, multi-chunk grid (exercises cross-chunk h/c carry): tight check.
    out_f32 = jax.block_until_ready(
        lstm_model_forward(x, params, matmul_dtype=jnp.float32, max_t_chunk=4))
    assert out_f32.shape == (B, output_dim)
    assert jnp.allclose(out_f32, ref, rtol=1e-3, atol=1e-4), (out_f32, ref)

    # Default bf16 matmul operands / bf16 streamed xw (MXU fast path), f32 gate math.
    out = jax.block_until_ready(lstm_model_forward(x, params, max_t_chunk=4))
    assert out.shape == (B, output_dim)
    assert jnp.allclose(out, ref, rtol=5e-2, atol=5e-2), (out, ref)

    print("KERNEL_OK")
</pallas_src>

<mosaic_0001>
module attributes {stable_mosaic.version = 11 : i64} {
  func.func @_lstm_recurrence_kernel(%arg0: i32, %arg1: memref<4x8x512xf32, #tpu.memory_space<vmem>>, %arg2: memref<128x512xf32, #tpu.memory_space<vmem>>, %arg3: memref<128x128xf32, #tpu.memory_space<vmem>>, %arg4: memref<1x128xf32, #tpu.memory_space<vmem>>, %arg5: memref<8x128xf32, #tpu.memory_space<vmem>>, %arg6: memref<8x128xf32, #tpu.memory_space<vmem>>, %arg7: memref<8x128xf32, #tpu.memory_space<vmem>>) attributes {dimension_semantics = [#tpu.dimension_semantics<arbitrary>], iteration_bounds = array<i64: 2>, scalar_prefetch = 0 : i64, scratch_operands = 2 : i64, tpu.core_type = #tpu.core_type<tc>, window_params = [{transform_indices = @transform_0, window_bounds = array<i64: 4, 8, 512>}, {pipeline_mode = #tpu.pipeline_mode<synchronous>, transform_indices = @transform_1, window_bounds = array<i64: 128, 512>}, {pipeline_mode = #tpu.pipeline_mode<synchronous>, transform_indices = @transform_2, window_bounds = array<i64: 128, 128>}, {pipeline_mode = #tpu.pipeline_mode<synchronous>, transform_indices = @transform_3, window_bounds = array<i64: 1, 128>}, {pipeline_mode = #tpu.pipeline_mode<synchronous>, transform_indices = @transform_4, window_bounds = array<i64: 8, 128>}]} {
    %c0_i32 = arith.constant 0 : i32
    %0 = arith.cmpi eq, %arg0, %c0_i32 : i32
    %1 = arith.extui %0 : i1 to i32
    %c0_i32_0 = arith.constant 0 : i32
    %2 = arith.cmpi ne, %1, %c0_i32_0 : i32
    scf.if %2 {
      %cst_34 = arith.constant 0.000000e+00 : f32
      %98 = vector.broadcast %cst_34 : f32 to vector<8x128xf32>
      %c0_35 = arith.constant 0 : index
      %c0_36 = arith.constant 0 : index
      %99 = vector.load %arg6[%c0_35, %c0_36] : memref<8x128xf32, #tpu.memory_space<vmem>>, vector<8x128xf32>
      tpu.vector_store %arg6[%c0_35, %c0_36], %98 {strides = array<i32>} : memref<8x128xf32, #tpu.memory_space<vmem>>, vector<8x128xf32>,
      %cst_37 = arith.constant 0.000000e+00 : f32
      %100 = vector.broadcast %cst_37 : f32 to vector<8x128xf32>
      %c0_38 = arith.constant 0 : index
      %c0_39 = arith.constant 0 : index
      %101 = vector.load %arg7[%c0_38, %c0_39] : memref<8x128xf32, #tpu.memory_space<vmem>>, vector<8x128xf32>
      tpu.vector_store %arg7[%c0_38, %c0_39], %100 {strides = array<i32>} : memref<8x128xf32, #tpu.memory_space<vmem>>, vector<8x128xf32>,
    } else {
    }
    %c0 = arith.constant 0 : index
    %c0_1 = arith.constant 0 : index
    %3 = vector.load %arg6[%c0, %c0_1] : memref<8x128xf32, #tpu.memory_space<vmem>>, vector<8x128xf32>
    %c0_2 = arith.constant 0 : index
    %c0_3 = arith.constant 0 : index
    %4 = vector.load %arg7[%c0_2, %c0_3] : memref<8x128xf32, #tpu.memory_space<vmem>>, vector<8x128xf32>
    %c0_i32_4 = arith.constant 0 : i32
    %5 = arith.index_cast %c0_i32_4 : i32 to index
    %c0_5 = arith.constant 0 : index
    %c0_6 = arith.constant 0 : index
    %6 = vector.load %arg1[%5, %c0_5, %c0_6] : memref<4x8x512xf32, #tpu.memory_space<vmem>>, vector<1x8x512xf32>
    %7 = vector.shape_cast %6 : vector<1x8x512xf32> to vector<8x512xf32>
    %c0_7 = arith.constant 0 : index
    %c0_8 = arith.constant 0 : index
    %8 = vector.load %arg2[%c0_7, %c0_8] : memref<128x512xf32, #tpu.memory_space<vmem>>, vector<128x512xf32>
    %cst = arith.constant dense<0.000000e+00> : vector<8x512xf32>
    %9 = tpu.matmul %3, %8, %cst {dimension_numbers = #tpu.dot_dimension_numbers<[1], [0], [0], [1], [0, 0, 1, 1], [], []>} : vector<8x128xf32>, vector<128x512xf32>, vector<8x512xf32> -> vector<8x512xf32>
    %10 = arith.addf %7, %9 : vector<8x512xf32>
    %11 = vector.extract_strided_slice %10 {offsets = [0, 0], sizes = [8, 384], strides = [1, 1]} : vector<8x512xf32> to vector<8x384xf32>
    %12 = arith.negf %11 : vector<8x384xf32>
    %13 = math.exp %12 : vector<8x384xf32>
    %cst_9 = arith.constant 1.000000e+00 : f32
    %14 = vector.broadcast %cst_9 : f32 to vector<8x384xf32>
    %15 = arith.addf %14, %13 : vector<8x384xf32>
    %16 = arith.divf %14, %15 : vector<8x384xf32>
    %17 = vector.extract_strided_slice %10 {offsets = [0, 384], sizes = [8, 128], strides = [1, 1]} : vector<8x512xf32> to vector<8x128xf32>
    %18 = math.tanh %17 : vector<8x128xf32>
    %19 = vector.extract_strided_slice %16 {offsets = [0, 0], sizes = [8, 128], strides = [1, 1]} : vector<8x384xf32> to vector<8x128xf32>
    %20 = vector.extract_strided_slice %16 {offsets = [0, 128], sizes = [8, 128], strides = [1, 1]} : vector<8x384xf32> to vector<8x128xf32>
    %21 = vector.extract_strided_slice %16 {offsets = [0, 256], sizes = [8, 128], strides = [1, 1]} : vector<8x384xf32> to vector<8x128xf32>
    %22 = arith.mulf %20, %4 : vector<8x128xf32>
    %23 = arith.mulf %19, %18 : vector<8x128xf32>
    %24 = arith.addf %22, %23 : vector<8x128xf32>
    %25 = math.tanh %24 : vector<8x128xf32>
    %26 = arith.mulf %21, %25 : vector<8x128xf32>
    %c1_i32 = arith.constant 1 : i32
    %27 = arith.index_cast %c1_i32 : i32 to index
    %c0_10 = arith.constant 0 : index
    %c0_11 = arith.constant 0 : index
    %28 = vector.load %arg1[%27, %c0_10, %c0_11] : memref<4x8x512xf32, #tpu.memory_space<vmem>>, vector<1x8x512xf32>
    %29 = vector.shape_cast %28 : vector<1x8x512xf32> to vector<8x512xf32>
    %c0_12 = arith.constant 0 : index
    %c0_13 = arith.constant 0 : index
    %30 = vector.load %arg2[%c0_12, %c0_13] : memref<128x512xf32, #tpu.memory_space<vmem>>, vector<128x512xf32>
    %cst_14 = arith.constant dense<0.000000e+00> : vector<8x512xf32>
    %31 = tpu.matmul %26, %30, %cst_14 {dimension_numbers = #tpu.dot_dimension_numbers<[1], [0], [0], [1], [0, 0, 1, 1], [], []>} : vector<8x128xf32>, vector<128x512xf32>, vector<8x512xf32> -> vector<8x512xf32>
    %32 = arith.addf %29, %31 : vector<8x512xf32>
    %33 = vector.extract_strided_slice %32 {offsets = [0, 0], sizes = [8, 384], strides = [1, 1]} : vector<8x512xf32> to vector<8x384xf32>
    %34 = arith.negf %33 : vector<8x384xf32>
    %35 = math.exp %34 : vector<8x384xf32>
    %cst_15 = arith.constant 1.000000e+00 : f32
    %36 = vector.broadcast %cst_15 : f32 to vector<8x384xf32>
    %37 = arith.addf %36, %35 : vector<8x384xf32>
    %38 = arith.divf %36, %37 : vector<8x384xf32>
    %39 = vector.extract_strided_slice %32 {offsets = [0, 384], sizes = [8, 128], strides = [1, 1]} : vector<8x512xf32> to vector<8x128xf32>
    %40 = math.tanh %39 : vector<8x128xf32>
    %41 = vector.extract_strided_slice %38 {offsets = [0, 0], sizes = [8, 128], strides = [1, 1]} : vector<8x384xf32> to vector<8x128xf32>
    %42 = vector.extract_strided_slice %38 {offsets = [0, 128], sizes = [8, 128], strides = [1, 1]} : vector<8x384xf32> to vector<8x128xf32>
    %43 = vector.extract_strided_slice %38 {offsets = [0, 256], sizes = [8, 128], strides = [1, 1]} : vector<8x384xf32> to vector<8x128xf32>
    %44 = arith.mulf %42, %24 : vector<8x128xf32>
    %45 = arith.mulf %41, %40 : vector<8x128xf32>
    %46 = arith.addf %44, %45 : vector<8x128xf32>
    %47 = math.tanh %46 : vector<8x128xf32>
    %48 = arith.mulf %43, %47 : vector<8x128xf32>
    %c2_i32 = arith.constant 2 : i32
    %49 = arith.index_cast %c2_i32 : i32 to index
    %c0_16 = arith.constant 0 : index
    %c0_17 = arith.constant 0 : index
    %50 = vector.load %arg1[%49, %c0_16, %c0_17] : memref<4x8x512xf32, #tpu.memory_space<vmem>>, vector<1x8x512xf32>
    %51 = vector.shape_cast %50 : vector<1x8x512xf32> to vector<8x512xf32>
    %c0_18 = arith.constant 0 : index
    %c0_19 = arith.constant 0 : index
    %52 = vector.load %arg2[%c0_18, %c0_19] : memref<128x512xf32, #tpu.memory_space<vmem>>, vector<128x512xf32>
    %cst_20 = arith.constant dense<0.000000e+00> : vector<8x512xf32>
    %53 = tpu.matmul %48, %52, %cst_20 {dimension_numbers = #tpu.dot_dimension_numbers<[1], [0], [0], [1], [0, 0, 1, 1], [], []>} : vector<8x128xf32>, vector<128x512xf32>, vector<8x512xf32> -> vector<8x512xf32>
    %54 = arith.addf %51, %53 : vector<8x512xf32>
    %55 = vector.extract_strided_slice %54 {offsets = [0, 0], sizes = [8, 384], strides = [1, 1]} : vector<8x512xf32> to vector<8x384xf32>
    %56 = arith.negf %55 : vector<8x384xf32>
    %57 = math.exp %56 : vector<8x384xf32>
    %cst_21 = arith.constant 1.000000e+00 : f32
    %58 = vector.broadcast %cst_21 : f32 to vector<8x384xf32>
    %59 = arith.addf %58, %57 : vector<8x384xf32>
    %60 = arith.divf %58, %59 : vector<8x384xf32>
    %61 = vector.extract_strided_slice %54 {offsets = [0, 384], sizes = [8, 128], strides = [1, 1]} : vector<8x512xf32> to vector<8x128xf32>
    %62 = math.tanh %61 : vector<8x128xf32>
    %63 = vector.extract_strided_slice %60 {offsets = [0, 0], sizes = [8, 128], strides = [1, 1]} : vector<8x384xf32> to vector<8x128xf32>
    %64 = vector.extract_strided_slice %60 {offsets = [0, 128], sizes = [8, 128], strides = [1, 1]} : vector<8x384xf32> to vector<8x128xf32>
    %65 = vector.extract_strided_slice %60 {offsets = [0, 256], sizes = [8, 128], strides = [1, 1]} : vector<8x384xf32> to vector<8x128xf32>
    %66 = arith.mulf %64, %46 : vector<8x128xf32>
    %67 = arith.mulf %63, %62 : vector<8x128xf32>
    %68 = arith.addf %66, %67 : vector<8x128xf32>
    %69 = math.tanh %68 : vector<8x128xf32>
    %70 = arith.mulf %65, %69 : vector<8x128xf32>
    %c3_i32 = arith.constant 3 : i32
    %71 = arith.index_cast %c3_i32 : i32 to index
    %c0_22 = arith.constant 0 : index
    %c0_23 = arith.constant 0 : index
    %72 = vector.load %arg1[%71, %c0_22, %c0_23] : memref<4x8x512xf32, #tpu.memory_space<vmem>>, vector<1x8x512xf32>
    %73 = vector.shape_cast %72 : vector<1x8x512xf32> to vector<8x512xf32>
    %c0_24 = arith.constant 0 : index
    %c0_25 = arith.constant 0 : index
    %74 = vector.load %arg2[%c0_24, %c0_25] : memref<128x512xf32, #tpu.memory_space<vmem>>, vector<128x512xf32>
    %cst_26 = arith.constant dense<0.000000e+00> : vector<8x512xf32>
    %75 = tpu.matmul %70, %74, %cst_26 {dimension_numbers = #tpu.dot_dimension_numbers<[1], [0], [0], [1], [0, 0, 1, 1], [], []>} : vector<8x128xf32>, vector<128x512xf32>, vector<8x512xf32> -> vector<8x512xf32>
    %76 = arith.addf %73, %75 : vector<8x512xf32>
    %77 = vector.extract_strided_slice %76 {offsets = [0, 0], sizes = [8, 384], strides = [1, 1]} : vector<8x512xf32> to vector<8x384xf32>
    %78 = arith.negf %77 : vector<8x384xf32>
    %79 = math.exp %78 : vector<8x384xf32>
    %cst_27 = arith.constant 1.000000e+00 : f32
    %80 = vector.broadcast %cst_27 : f32 to vector<8x384xf32>
    %81 = arith.addf %80, %79 : vector<8x384xf32>
    %82 = arith.divf %80, %81 : vector<8x384xf32>
    %83 = vector.extract_strided_slice %76 {offsets = [0, 384], sizes = [8, 128], strides = [1, 1]} : vector<8x512xf32> to vector<8x128xf32>
    %84 = math.tanh %83 : vector<8x128xf32>
    %85 = vector.extract_strided_slice %82 {offsets = [0, 0], sizes = [8, 128], strides = [1, 1]} : vector<8x384xf32> to vector<8x128xf32>
    %86 = vector.extract_strided_slice %82 {offsets = [0, 128], sizes = [8, 128], strides = [1, 1]} : vector<8x384xf32> to vector<8x128xf32>
    %87 = vector.extract_strided_slice %82 {offsets = [0, 256], sizes = [8, 128], strides = [1, 1]} : vector<8x384xf32> to vector<8x128xf32>
    %88 = arith.mulf %86, %68 : vector<8x128xf32>
    %89 = arith.mulf %85, %84 : vector<8x128xf32>
    %90 = arith.addf %88, %89 : vector<8x128xf32>
    %91 = math.tanh %90 : vector<8x128xf32>
    %92 = arith.mulf %87, %91 : vector<8x128xf32>
    %c4_i32 = arith.constant 4 : i32
    %c0_28 = arith.constant 0 : index
    %c0_29 = arith.constant 0 : index
    %93 = vector.load %arg6[%c0_28, %c0_29] : memref<8x128xf32, #tpu.memory_space<vmem>>, vector<8x128xf32>
    tpu.vector_store %arg6[%c0_28, %c0_29], %92 {strides = array<i32>} : memref<8x128xf32, #tpu.memory_space<vmem>>, vector<8x128xf32>,
    %c0_30 = arith.constant 0 : index
    %c0_31 = arith.constant 0 : index
    %94 = vector.load %arg7[%c0_30, %c0_31] : memref<8x128xf32, #tpu.memory_space<vmem>>, vector<8x128xf32>
    tpu.vector_store %arg7[%c0_30, %c0_31], %90 {strides = array<i32>} : memref<8x128xf32, #tpu.memory_space<vmem>>, vector<8x128xf32>,
    %c1_i32_32 = arith.constant 1 : i32
    %95 = arith.cmpi eq, %arg0, %c1_i32_32 : i32
    %96 = arith.extui %95 : i1 to i32
    %c0_i32_33 = arith.constant 0 : i32
    %97 = arith.cmpi ne, %96, %c0_i32_33 : i32
    scf.if %97 {
      %c0_34 = arith.constant 0 : index
      %c0_35 = arith.constant 0 : index
      %98 = vector.load %arg3[%c0_34, %c0_35] : memref<128x128xf32, #tpu.memory_space<vmem>>, vector<128x128xf32>
      %cst_36 = arith.constant dense<0.000000e+00> : vector<8x128xf32>
      %99 = tpu.matmul %92, %98, %cst_36 {dimension_numbers = #tpu.dot_dimension_numbers<[1], [0], [0], [1], [0, 0, 1, 1], [], []>} : vector<8x128xf32>, vector<128x128xf32>, vector<8x128xf32> -> vector<8x128xf32>
      %c0_37 = arith.constant 0 : index
      %c0_38 = arith.constant 0 : index
      %100 = vector.load %arg4[%c0_37, %c0_38] : memref<1x128xf32, #tpu.memory_space<vmem>>, vector<1x128xf32>
      %101 = vector.broadcast %100 : vector<1x128xf32> to vector<8x128xf32>
      %102 = arith.addf %99, %101 : vector<8x128xf32>
      %c0_39 = arith.constant 0 : index
      %c0_40 = arith.constant 0 : index
      %103 = vector.load %arg5[%c0_39, %c0_40] : memref<8x128xf32, #tpu.memory_space<vmem>>, vector<8x128xf32>
      tpu.vector_store %arg5[%c0_39, %c0_40], %102 {strides = array<i32>} : memref<8x128xf32, #tpu.memory_space<vmem>>, vector<8x128xf32>,
    } else {
    }
    return
  }
  func.func @transform_0(%arg0: i32) -> (i32, i32, i32) {
    %c0_i32 = arith.constant 0 : i32
    %c0_i32_0 = arith.constant 0 : i32
    %c0_i32_1 = arith.constant 0 : i32
    return %arg0, %c0_i32, %c0_i32_0 : i32, i32, i32
  }
  func.func @transform_1(%arg0: i32) -> (i32, i32) {
    %c0_i32 = arith.constant 0 : i32
    %c0_i32_0 = arith.constant 0 : i32
    %c0_i32_1 = arith.constant 0 : i32
    return %c0_i32, %c0_i32_0 : i32, i32
  }
  func.func @transform_2(%arg0: i32) -> (i32, i32) {
    %c0_i32 = arith.constant 0 : i32
    %c0_i32_0 = arith.constant 0 : i32
    %c0_i32_1 = arith.constant 0 : i32
    return %c0_i32, %c0_i32_0 : i32, i32
  }
  func.func @transform_3(%arg0: i32) -> (i32, i32) {
    %c0_i32 = arith.constant 0 : i32
    %c0_i32_0 = arith.constant 0 : i32
    %c0_i32_1 = arith.constant 0 : i32
    return %c0_i32, %c0_i32_0 : i32, i32
  }
  func.func @transform_4(%arg0: i32) -> (i32, i32) {
    %c0_i32 = arith.constant 0 : i32
    %c0_i32_0 = arith.constant 0 : i32
    %c0_i32_1 = arith.constant 0 : i32
    return %c0_i32, %c0_i32_0 : i32, i32
  }
}

</mosaic_0001>

<bundles_post_ra>
// kernel: tpu_custom_call.1
= control target key start
LH: loop header
LB: loop body
LE: loop exit
PB: predicated region body
PF: predicated region fallthrough
CT: control target
= control target key end

     0   :  { %9 = vsyncpa [#allocation5], 0  ;;  %s2326_s0 = inlined_call_operand.hbm [shape: f32[8,8,512], index: 0, kind: input, shape index: {}]   ;;  %s2327_s1 = inlined_call_operand.hbm [shape: f32[128,512], index: 1, kind: input, shape index: {}]   ;;  %s2328_s2 = inlined_call_operand.hbm [shape: f32[128,128], index: 2, kind: input, shape index: {}]   ;;  %s2329_s3 = inlined_call_operand.vmem [shape: f32[1,128], index: 3, kind: input, shape index: {}]   ;;  %s2330_s4 = inlined_call_operand.hbm [shape: f32[8,128], index: 4, kind: output, shape index: {}]  }
   0x1   :  { %11 = vsyncpa [#allocation5 + $0x1], 0 }
   0x2   :  { %12 = vsyncpa [#allocation8], 0 }
   0x3   :  { %13 = vsyncpa [#allocation6], 0  ;;  %s1894_s15 = smov 0   ;;  %s1896_s16 = smov 0  }
   0x4   :  { %s1898_s17 = smov 0   ;;  %s1900_s18 = smov 0  }
   0x5 LB: > { %s1913_s19 = sadd.s32 4294967295, %s1854_s18   ;;  %p39_p0 = scmp.ne.s32.totalorder %s1846_s16, %s1842_s15  ;;  %s1854_s18 = sphi %s1900_s18, %s2346_s18   ;;  %s1850_s17 = sphi %s1898_s17, %s2345_s17   ;;  %s1846_s16 = sphi %s1896_s16, %s2344_s16   ;;  %s1842_s15 = sphi %s1894_s15, %s2343_s15  }
   0x6   : > { %p2331_p1 = scmp.eq.s32.totalorder %s1913_s19, 0  ;;  %p1183_p2 = scmp.ge.s32.totalorder %s1854_s18, 1 }
   0x7   : > { %p134_p3 = scmp.lt.s32.totalorder %s1854_s18, 3  ;;  %s1856_s22 = smov [#allocation7]  }
   0x8   : > { %p1922_p5 = por %p2331_p1, %p39_p0  ;;  %s146_s23 = sshll.u32 %s1856_s22, 4  ;;  %s147_s23 = int_to_ptr.vmem [resolvable:$true] %s146_s23 }
   0x9   : > { %p1926_p6 = pnand %p1183_p2, %p134_p3  ;;  %s1857_s25 = smov [#allocation9]  }
   0xa   : > { %s2334_s20 = scalar_select %p1922_p5, 1, 0 }
   0xb   : > { %s2335_s21 = scalar_select %p1926_p6, 1, 0 }
   0xc   : > { %p1574_p7 = pneg %p1926_p6  ;;  %s159_s26 = sshll.u32 %s1857_s25, 4  ;;  %s1938_s26 = int_to_ptr.vmem [resolvable:$true] %s159_s26 }
   0xd   : > { %s1700_s29 = scalar_lea.hbm %s2327_s1, 8192 }
   0xe   : > { %p1934_p8 = pnand %p1574_p7, %p2331_p1  ;;  %p1701_p9 = scmp.ne.s32.totalorder %s2327_s1, %s1700_s29 }
   0xf   : > { %p1707_p13 = scmp.lt.u32.totalorder %s1700_s29, %s2327_s1 }
  0x10   : > { %p1702_p10 = pneg %p1934_p8 }
  0x12   : > { %p1703_p11 = pnand %p1702_p10, %p1701_p9 }
  0x14   : > { %p1704_p12 = pneg %p1703_p11 }
  0x16   : > { %p1709_p0 = pnand %p1707_p13, %p1704_p12 }
  0x18   : > { %1712 = shalt.err (!%p1709_p0)
}
  0x19   : > { %s1713_s8 = scalar_lea.vmem %s147_s23, 8192  ;;  %p1721_p4 = scmp.lt.s32.totalorder %s147_s23, %s147_s23 }
  0x1a   : > { %p1714_p2 = scmp.ne.s32.totalorder %s147_s23, %s1713_s8  ;;  %p1722_p1 = scmp.lt.s32.totalorder %s1713_s8, %s1713_s8 }
  0x1c   : > { %p1716_p3 = pnand %p1714_p2, %p1702_p10  ;;  %p1723_p5 = por %p1722_p1, %p1721_p4 }
  0x1e   : > { %p1717_p7 = pneg %p1716_p3 }
  0x20   : > { %p1724_p6 = pnand %p1723_p5, %p1717_p7 }
  0x22   : > { %1727 = shalt.err (!%p1724_p6)
}
  0x23   : > { %s1858_s9 = smov 512   ;;  %s1859_s10 = smov 32  }
  0x24   : > { %1577 = dma.hbm_to_vmem [thread:$0]  (!%p1934_p8), %s2327_s1, 8192, %s147_s23, [#allocation8], %s1858_s9, %s1858_s9, %s1859_s10  }
  0x25   : > { %s1728_s15 = scalar_lea.hbm %s2328_s2, 2048 }
  0x26   : > { %p1729_p1 = scmp.ne.s32.totalorder %s2328_s2, %s1728_s15  ;;  %p1735_p6 = scmp.lt.u32.totalorder %s1728_s15, %s2328_s2 }
  0x28   : > { %p1731_p4 = pnand %p1729_p1, %p1702_p10 }
  0x2a   : > { %p1732_p5 = pneg %p1731_p4 }
  0x2c   : > { %p1737_p9 = pnand %p1735_p6, %p1732_p5 }
  0x2e   : > { %1740 = shalt.err (!%p1737_p9)
}
  0x2f   : > { %s1741_s23 = scalar_lea.vmem %s1938_s26, 2048  ;;  %p1749_p0 = scmp.lt.s32.totalorder %s1938_s26, %s1938_s26 }
  0x30   : > { %p1742_p11 = scmp.ne.s32.totalorder %s1938_s26, %s1741_s23  ;;  %p1750_p2 = scmp.lt.s32.totalorder %s1741_s23, %s1741_s23 }
  0x32   : > { %p1744_p12 = pnand %p1742_p11, %p1702_p10  ;;  %p1751_p3 = por %p1750_p2, %p1749_p0 }
  0x34   : > { %p1745_p13 = pneg %p1744_p12 }
  0x36   : > { %p1752_p7 = pnand %p1751_p3, %p1745_p13 }
  0x38   : > { %1755 = shalt.err (!%p1752_p7)
}
  0x39   : > { %s1860_s29 = smov 128   ;;  %s1861_s30 = smov 8  }
  0x3a   : > { %1580 = dma.hbm_to_vmem [thread:$0]  (!%p1934_p8), %s2328_s2, 2048, %s1938_s26, [#allocation8], %s1860_s29, %s1860_s29, %s1861_s30  }
  0x3b   : > { %s1991_s7 = sadd.s32 1, %s1854_s18   ;;  %s26_s11 = sadd.s32 1, %s1850_s17 }
  0x3c   : > { %s23_s8 = ssub.s32 %s1854_s18, %s1991_s7  ;;  %p33_p1 = scmp.ne.s32.totalorder %s1850_s17, %s1846_s16 }
  0x3d   : > { %p24_p10 = scmp.eq.s32.totalorder %s23_s8, 0  ;;  %p34_p4 = scmp.eq.s32.totalorder %s1854_s18, 0 }
  0x3e   : > { %p1587_p6 = scmp.lt.s32.totalorder %s1854_s18, 2  ;;  %s176_s13 = sand.u32 1, %s1850_s17  }
  0x3f   : > { %s2000_s12 = scalar_select %p24_p10, %s1850_s17, %s26_s11  }
  0x40   : > { %p35_p5 = por %p34_p4, %p33_p1  ;;  %s1227_s14 = sshll.u32 %s1854_s18, 11 }
  0x41   : > { %s1187_s15 = sshll.u32 %s176_s13, 7  ;;  %s2008_s25 = scalar_lea.hbm %s2326_s0, %s1227_s14 }
  0x42   : > { %s180_s26 = scalar_lea.vmem [#allocation4], %s1187_s15  ;;  %p2010_p8 = pnand %p1587_p6, %p35_p5 }
  0x43   : > { %s188_s27 = sshll.u32 %s180_s26, 4  ;;  %s2016_s18 = scalar_lea.sflag [#allocation5], %s176_s13  ;;  %s2014_s27 = int_to_ptr.vmem [resolvable:$true] %s188_s27 }
  0x44   : > { %s1756_s23 = scalar_lea.hbm %s2008_s25, 2048  ;;  %p1758_p11 = pneg %p2010_p8 }
  0x45   : > { %p1757_p9 = scmp.ne.s32.totalorder %s2008_s25, %s1756_s23  ;;  %s1761_s5 = scalar_lea.hbm %s2326_s0, 4096 }
  0x46   : > { %p1762_p0 = scmp.lt.u32.totalorder %s2008_s25, %s2326_s0  ;;  %p1763_p2 = scmp.lt.u32.totalorder %s1761_s5, %s1756_s23 }
  0x47   : > { %p1759_p12 = pnand %p1758_p11, %p1757_p9  ;;  %p1765_p7 = scmp.lt.u32.totalorder %s1756_s23, %s2008_s25 }
  0x48   : > { %p1764_p3 = por %p1763_p2, %p1762_p0 }
  0x49   : > { %p1760_p13 = pneg %p1759_p12 }
  0x4a   : > { %p1766_p10 = por %p1765_p7, %p1764_p3 }
  0x4c   : > { %p1767_p1 = pnand %p1766_p10, %p1760_p13 }
  0x4e   : > { %1770 = shalt.err (!%p1767_p1)
}
  0x4f   : > { %s1771_s11 = scalar_lea.vmem %s2014_s27, 2048  ;;  %s1862_s13 = smov [#allocation4]  }
  0x50   : > { %p1772_p4 = scmp.ne.s32.totalorder %s2014_s27, %s1771_s11  ;;  %s1776_s14 = sshll.u32 %s1862_s13, 4  ;;  %s1777_s14 = int_to_ptr.vmem [resolvable:$false] %s1776_s14 }
  0x51   : > { %s1778_s15 = scalar_lea.vmem %s1777_s14, 4096  ;;  %p1779_p9 = scmp.lt.s32.totalorder %s2014_s27, %s1777_s14 }
  0x52   : > { %p1774_p5 = pnand %p1772_p4, %p1758_p11  ;;  %p1780_p12 = scmp.lt.s32.totalorder %s1778_s15, %s1771_s11 }
  0x54   : > { %p1775_p6 = pneg %p1774_p5  ;;  %p1781_p0 = por %p1780_p12, %p1779_p9 }
  0x56   : > { %p1782_p2 = pnand %p1781_p0, %p1775_p6 }
  0x58   : > { %1785 = shalt.err (!%p1782_p2)
}
  0x59   : > { %1584 = dma.hbm_to_vmem [thread:$0]  (!%p2010_p8), %s2008_s25, 2048, %s2014_s27, %s2016_s18, %s1858_s9, %s1858_s9, %s1859_s10  }
  0x5a   : > { %p2338_p11 = scmp.ne.s32.totalorder %s2335_s21, 0 }
  0x5b   : > { %s202_s24 = sand.u32 (!%p2338_p11), 1, %s1846_s16   ;;  %p2339_p13 = scmp.ne.s32.totalorder (!%p2338_p11), %s2334_s20, 0 }
  0x5c   : > { %200 = sbr.rel (%p2338_p11) target bundleno = 1420 (0x58c), region = 36  ;;  %s1192_s22 = sshll.u32 (!%p2338_p11), %s202_s24, 7 }
  0x5d   : > { %s203_s26 = scalar_lea.sflag (!%p2338_p11), [#allocation5], %s202_s24  ;;  %s2050_s23 = scalar_lea.vmem (!%p2338_p11), [#allocation4], %s1192_s22 }
  0x63   : > { %1829 = dma.done.wait (%p2339_p13), %s203_s26, 2048  }
  0x64   : > { %1831 = vsyncadd (%p2339_p13), %s203_s26, 4294965248  ;;  %p2340_p3 = scmp.eq.s32.totalorder %s1913_s19, 0 }
  0x66   : > { %1833 = dma.done.wait (%p2340_p3), [#allocation8], 10240   ;;  %p2341_p8 = pmov %p2340_p3 }
  0x67   : > { %p2342_p7 = scmp.ne.s32.totalorder %s1913_s19, 0 }
  0x68   : > { %1835 = vsyncadd (%p2341_p8), [#allocation8], 4294957056  ;;  %v1863_v0 = vmov (!%p2342_p7), 0.0  }
  0x69   : > { %238 = sbr.rel (%p2342_p7) target bundleno = 112 (0x70), region = 52  ;;  %239 = vst [vmem:[#allocation2] sm:$0xff] (!%p2342_p7), %v1863_v0  ;;  %240 = vst [vmem:[#allocation3] sm:$0xff] (!%p2342_p7), %v1863_v0 }
  0x70 PF: > { %v248_v1 = vld [vmem:[#allocation7 + $0x8] sm:$0xff]  ;;  %v247_v3 = vld [vmem:[#allocation7] sm:$0xff]  ;;  %v1864_v8 = vmov 0.0   ;;  %v250_v20 = vld [vmem:[#allocation7 + $0x18] sm:$0xff]  ;;  %p1220_p10 = scmp.ne.s32.totalorder %s1913_s19, 1 }
  0x71   : > { %v252_v2 = vld [vmem:[#allocation7 + $0x28] sm:$0xff]  ;;  %v251_v5 = vld [vmem:[#allocation7 + $0x20] sm:$0xff]  ;;  %375 = vmatprep.mubr.f32.mxu0 %v1864_v8  ;;  %446 = vmatprep.mubr.f32.mxu1 %v1864_v8  ;;  %v254_v21 = vld [vmem:[#allocation7 + $0x38] sm:$0xff]  ;;  %vm1866_vm0 = vmmov (!%p1220_p10), 0  }
  0x72   : > { %v2062_v4 = vpack.c.bf16 %v252_v2, %v248_v1  ;;  %v256_v6 = vld [vmem:[#allocation7 + $0x48] sm:$0xff]  ;;  %v2066_v9 = vpack.c.bf16 %v251_v5, %v247_v3  ;;  %v255_v11 = vld [vmem:[#allocation7 + $0x40] sm:$0xff]  ;;  %v2077_v23 = vpack.c.bf16 %v254_v21, %v250_v20  ;;  %v249_v24 = vld [vmem:[#allocation7 + $0x10] sm:$0xff] }
  0x73   : > { %v260_v7 = vld [vmem:[#allocation7 + $0x68] sm:$0xff]  ;;  %v259_v12 = vld [vmem:[#allocation7 + $0x60] sm:$0xff]  ;;  %v253_v25 = vld [vmem:[#allocation7 + $0x30] sm:$0xff] }
  0x74   : > { %v2068_v10 = vpack.c.bf16 %v260_v7, %v256_v6  ;;  %v264_v13 = vld [vmem:[#allocation7 + $0x88] sm:$0xff]  ;;  %1281 = vmatprep.subr.bf16.mxu0 %v2062_v4  ;;  %v2072_v15 = vpack.c.bf16 %v259_v12, %v255_v11  ;;  %v263_v16 = vld [vmem:[#allocation7 + $0x80] sm:$0xff]  ;;  %v2079_v26 = vpack.c.bf16 %v253_v25, %v249_v24  ;;  %1313 = vmatprep.subr.bf16.mxu1 %v2077_v23  ;;  %v258_v28 = vld [vmem:[#allocation7 + $0x58] sm:$0xff] }
  0x75   : > { %v268_v14 = vld [vmem:[#allocation7 + $0xa8] sm:$0xff]  ;;  %1283 = vmatpush1.bf16.msra.mxu0 %v2066_v9  ;;  %v267_v17 = vld [vmem:[#allocation7 + $0xa0] sm:$0xff]  ;;  %v262_v29 = vld [vmem:[#allocation7 + $0x78] sm:$0xff] }
  0x76   : > { %1285 = vmatprep.subr.bf16.mxu0 %v2068_v10  ;;  %v2075_v18 = vpack.c.bf16 %v268_v14, %v264_v13  ;;  %v272_v19 = vld [vmem:[#allocation7 + $0xc8] sm:$0xff]  ;;  %v2082_v27 = vpack.c.bf16 %v267_v17, %v263_v16  ;;  %v257_v30 = vld [vmem:[#allocation7 + $0x50] sm:$0xff]  ;;  %v271_v32 = vld [vmem:[#allocation7 + $0xc0] sm:$0xff]  ;;  %1315 = vmatpush1.bf16.msra.mxu1 %v2079_v26  ;;  %v2089_v34 = vpack.c.bf16 %v262_v29, %v258_v28 }
  0x77   : > { %v276_v22 = vld [vmem:[#allocation7 + $0xe8] sm:$0xff]  ;;  %v275_v33 = vld [vmem:[#allocation7 + $0xe0] sm:$0xff]  ;;  %v261_v35 = vld [vmem:[#allocation7 + $0x70] sm:$0xff] }
  0x78   : > { %v2086_v31 = vpack.c.bf16 %v276_v22, %v272_v19  ;;  %v280_v36 = vld [vmem:[#allocation7 + $0x108] sm:$0xff]  ;;  %v2091_v38 = vpack.c.bf16 %v261_v35, %v257_v30  ;;  %v266_v39 = vld [vmem:[#allocation7 + $0x98] sm:$0xff]  ;;  %1317 = vmatprep.subr.bf16.mxu1 %v2089_v34  ;;  %v265_v41 = vld [vmem:[#allocation7 + $0x90] sm:$0xff]  ;;  %v2095_v43 = vpack.c.bf16 %v275_v33, %v271_v32 }
  0x79   : > { %1287 = vmatpush1.bf16.msra.mxu0 %v2072_v15  ;;  %v284_v37 = vld [vmem:[#allocation7 + $0x128] sm:$0xff]  ;;  %v270_v40 = vld [vmem:[#allocation7 + $0xb8] sm:$0xff]  ;;  %v269_v42 = vld [vmem:[#allocation7 + $0xb0] sm:$0xff] }
  0x7a   : > { %1289 = vmatprep.subr.bf16.mxu0 %v2075_v18  ;;  %v279_v44 = vld [vmem:[#allocation7 + $0x100] sm:$0xff]  ;;  %v2097_v46 = vpack.c.bf16 %v270_v40, %v266_v39  ;;  %v2100_v47 = vpack.c.bf16 %v284_v37, %v280_v36  ;;  %1319 = vmatpush1.bf16.msra.mxu1 %v2091_v38  ;;  %v288_v48 = vld [vmem:[#allocation7 + $0x148] sm:$0xff]  ;;  %v2103_v49 = vpack.c.bf16 %v269_v42, %v265_v41  ;;  %v274_v50 = vld [vmem:[#allocation7 + $0xd8] sm:$0xff] }
  0x7b   : > { %v283_v45 = vld [vmem:[#allocation7 + $0x120] sm:$0xff]  ;;  %v278_v51 = vld [vmem:[#allocation7 + $0xf8] sm:$0xff]  ;;  %v292_v52 = vld [vmem:[#allocation7 + $0x168] sm:$0xff] }
  0x7c   : > { %1321 = vmatprep.subr.bf16.mxu1 %v2097_v46  ;;  %v2106_v53 = vpack.c.bf16 %v278_v51, %v274_v50  ;;  %v273_v54 = vld [vmem:[#allocation7 + $0xd0] sm:$0xff]  ;;  %v2109_v56 = vpack.c.bf16 %v283_v45, %v279_v44  ;;  %v282_v57 = vld [vmem:[#allocation7 + $0x118] sm:$0xff]  ;;  %v2112_v59 = vpack.c.bf16 %v292_v52, %v288_v48  ;;  %v287_v60 = vld [vmem:[#allocation7 + $0x140] sm:$0xff] }
  0x7d   : > { %1291 = vmatpush1.bf16.msra.mxu0 %v2082_v27  ;;  %v277_v55 = vld [vmem:[#allocation7 + $0xf0] sm:$0xff]  ;;  %v286_v58 = vld [vmem:[#allocation7 + $0x138] sm:$0xff]  ;;  %v291_v61 = vld [vmem:[#allocation7 + $0x160] sm:$0xff] }
  0x7e   : > { %1293 = vmatprep.subr.bf16.mxu0 %v2086_v31  ;;  %1323 = vmatpush1.bf16.msra.mxu1 %v2103_v49  ;;  %v296_v62 = vld [vmem:[#allocation7 + $0x188] sm:$0xff]  ;;  %v2115_v63 = vpack.c.bf16 %v277_v55, %v273_v54  ;;  %v2118_v1 = vpack.c.bf16 %v286_v58, %v282_v57  ;;  %v281_v2 = vld [vmem:[#allocation7 + $0x110] sm:$0xff]  ;;  %v290_v5 = vld [vmem:[#allocation7 + $0x158] sm:$0xff]  ;;  %v2121_v7 = vpack.c.bf16 %v291_v61, %v287_v60 }
  0x7f   : > { %v300_v0 = vld [vmem:[#allocation7 + $0x1a8] sm:$0xff]  ;;  %1325 = vmatprep.subr.bf16.mxu1 %v2106_v53  ;;  %v285_v3 = vld [vmem:[#allocation7 + $0x130] sm:$0xff]  ;;  %v294_v6 = vld [vmem:[#allocation7 + $0x178] sm:$0xff] }
  0x80   : > { %v2124_v11 = vpack.c.bf16 %v300_v0, %v296_v62  ;;  %v295_v12 = vld [vmem:[#allocation7 + $0x180] sm:$0xff]  ;;  %v304_v14 = vld [vmem:[#allocation7 + $0x1c8] sm:$0xff]  ;;  %v2127_v16 = vpack.c.bf16 %v285_v3, %v281_v2  ;;  %v2130_v19 = vpack.c.bf16 %v294_v6, %v290_v5  ;;  %v289_v20 = vld [vmem:[#allocation7 + $0x150] sm:$0xff] }
  0x81   : > { %1295 = vmatpush1.bf16.msra.mxu0 %v2095_v43  ;;  %v299_v13 = vld [vmem:[#allocation7 + $0x1a0] sm:$0xff]  ;;  %v308_v17 = vld [vmem:[#allocation7 + $0x1e8] sm:$0xff]  ;;  %v293_v21 = vld [vmem:[#allocation7 + $0x170] sm:$0xff] }
  0x82   : > { %1297 = vmatprep.subr.bf16.mxu0 %v2100_v47  ;;  %1327 = vmatpush1.bf16.msra.mxu1 %v2115_v63  ;;  %v298_v22 = vld [vmem:[#allocation7 + $0x198] sm:$0xff]  ;;  %v2133_v25 = vpack.c.bf16 %v299_v13, %v295_v12  ;;  %v2136_v28 = vpack.c.bf16 %v308_v17, %v304_v14  ;;  %v303_v29 = vld [vmem:[#allocation7 + $0x1c0] sm:$0xff]  ;;  %v2139_v32 = vpack.c.bf16 %v293_v21, %v289_v20  ;;  %v297_v35 = vld [vmem:[#allocation7 + $0x190] sm:$0xff] }
  0x83   : > { %1329 = vmatprep.subr.bf16.mxu1 %v2118_v1  ;;  %v302_v24 = vld [vmem:[#allocation7 + $0x1b8] sm:$0xff]  ;;  %v307_v30 = vld [vmem:[#allocation7 + $0x1e0] sm:$0xff]  ;;  %v301_v36 = vld [vmem:[#allocation7 + $0x1b0] sm:$0xff] }
  0x84   : > { %v2142_v33 = vpack.c.bf16 %v302_v24, %v298_v22  ;;  %v306_v37 = vld [vmem:[#allocation7 + $0x1d8] sm:$0xff]  ;;  %v2145_v40 = vpack.c.bf16 %v307_v30, %v303_v29  ;;  %v2149_v41 = vpack.c.bf16 %v301_v36, %v297_v35  ;;  %v305_v44 = vld [vmem:[#allocation7 + $0x1d0] sm:$0xff]  ;;  %v243_v51 = vld [vmem:[%s2050_s23] sm:$0xff] }
  0x85   : > { %1299 = vmatpush1.bf16.msra.mxu0 %v2109_v56  ;;  %v310_v39 = vld [vmem:[#allocation7 + $0x1f8] sm:$0xff]  ;;  %v309_v45 = vld [vmem:[#allocation7 + $0x1f0] sm:$0xff]  ;;  %v244_v52 = vld [vmem:[%s2050_s23 + $0x8] sm:$0xff] }
  0x86   : > { %1301 = vmatprep.subr.bf16.mxu0 %v2112_v59  ;;  %1331 = vmatpush1.bf16.msra.mxu1 %v2127_v16  ;;  %v2152_v42 = vpack.c.bf16 %v310_v39, %v306_v37  ;;  %v241_v48 = vld [vmem:[#allocation2] sm:$0xff]  ;;  %v2156_v50 = vpack.c.bf16 %v309_v45, %v305_v44  ;;  %v246_v5 = vld [vmem:[%s2050_s23 + $0x18] sm:$0xff] }
  0x87   : > { %1333 = vmatprep.subr.bf16.mxu1 %v2130_v19  ;;  %v245_v62 = vld [vmem:[%s2050_s23 + $0x10] sm:$0xff]  ;;  %v242_v24 = vld [vmem:[#allocation3] sm:$0xff] }
  0x89   : > { %1303 = vmatpush1.bf16.msra.mxu0 %v2121_v7 }
  0x8a   : > { %1305 = vmatprep.subr.bf16.mxu0 %v2124_v11  ;;  %1335 = vmatpush1.bf16.msra.mxu1 %v2139_v32 }
  0x8b   : > { %1337 = vmatprep.subr.bf16.mxu1 %v2142_v33 }
  0x8d   : > { %1307 = vmatpush1.bf16.msra.mxu0 %v2133_v25 }
  0x8e   : > { %1309 = vmatprep.subr.bf16.mxu0 %v2136_v28  ;;  %1339 = vmatpush1.bf16.msra.mxu1 %v2149_v41 }
  0x8f   : > { %1341 = vmatprep.subr.bf16.mxu1 %v2152_v42 }
  0x91   : > { %1311 = vmatpush1.bf16.msra.mxu0 %v2145_v40 }
  0x92   : > { %1345 = vmatprep.subr.bf16.mxu0 %v2062_v4  ;;  %1343 = vmatpush1.bf16.msra.mxu1 %v2156_v50 }
  0x93   : > { %1377 = vmatprep.subr.bf16.mxu1 %v2077_v23 }
  0x94   : > { %376 = vmatmul.mubr.f32.vlgmr.msra.gmra.mrb[0].mxu0 %v241_v48 }
  0x95   : > { %1347 = vmatpush1.bf16.msra.mxu0 %v2066_v9  ;;  %550 = vmatprep.mubr.f32.mxu0 %v1864_v8 }
  0x96   : > { %1349 = vmatprep.subr.bf16.mxu0 %v2068_v10  ;;  %447 = vmatmul.mubr.f32.vlgmr.msra.gmra.mrb[0].mxu1 %v241_v48 }
  0x97   : > { %1379 = vmatpush1.bf16.msra.mxu1 %v2079_v26  ;;  %621 = vmatprep.mubr.f32.mxu1 %v1864_v8 }
  0x98   : > { %1381 = vmatprep.subr.bf16.mxu1 %v2089_v34 }
  0x99   : > { %1351 = vmatpush1.bf16.msra.mxu0 %v2072_v15 }
  0x9a   : > { %1353 = vmatprep.subr.bf16.mxu0 %v2075_v18 }
  0x9b   : > { %1383 = vmatpush1.bf16.msra.mxu1 %v2091_v38 }
  0x9c   : > { %1385 = vmatprep.subr.bf16.mxu1 %v2097_v46 }
  0x9d   : > { %1355 = vmatpush1.bf16.msra.mxu0 %v2082_v27 }
  0x9e   : > { %1357 = vmatprep.subr.bf16.mxu0 %v2086_v31 }
  0x9f   : > { %1387 = vmatpush1.bf16.msra.mxu1 %v2103_v49 }
  0xa0   : > { %1389 = vmatprep.subr.bf16.mxu1 %v2106_v53 }
  0xa1   : > { %1359 = vmatpush1.bf16.msra.mxu0 %v2095_v43 }
  0xa2   : > { %1361 = vmatprep.subr.bf16.mxu0 %v2100_v47 }
  0xa3   : > { %1391 = vmatpush1.bf16.msra.mxu1 %v2115_v63 }
  0xa4   : > { %1393 = vmatprep.subr.bf16.mxu1 %v2118_v1 }
  0xa5   : > { %1363 = vmatpush1.bf16.msra.mxu0 %v2109_v56 }
  0xa6   : > { %1365 = vmatprep.subr.bf16.mxu0 %v2112_v59 }
  0xa7   : > { %1395 = vmatpush1.bf16.msra.mxu1 %v2127_v16 }
  0xa8   : > { %1397 = vmatprep.subr.bf16.mxu1 %v2130_v19 }
  0xa9   : > { %1367 = vmatpush1.bf16.msra.mxu0 %v2121_v7 }
  0xaa   : > { %1369 = vmatprep.subr.bf16.mxu0 %v2124_v11 }
  0xab   : > { %1399 = vmatpush1.bf16.msra.mxu1 %v2139_v32 }
  0xac   : > { %1401 = vmatprep.subr.bf16.mxu1 %v2142_v33 }
  0xad   : > { %1371 = vmatpush1.bf16.msra.mxu0 %v2133_v25 }
  0xae   : > { %1373 = vmatprep.subr.bf16.mxu0 %v2136_v28 }
  0xaf   : > { %1403 = vmatpush1.bf16.msra.mxu1 %v2149_v41 }
  0xb0   : > { %1405 = vmatprep.subr.bf16.mxu1 %v2152_v42 }
  0xb1   : > { %1375 = vmatpush1.bf16.msra.mxu0 %v2145_v40 }
  0xb2   : > { %1409 = vmatprep.subr.bf16.mxu0 %v2062_v4 }
  0xb3   : > { %1407 = vmatpush1.bf16.msra.mxu1 %v2156_v50 }
  0xb4   : > { %1441 = vmatprep.subr.bf16.mxu1 %v2077_v23 }
 0x167   : > { %v377_v54 = vpop.f32.mrb[0].mxu0 }
 0x168   : > { %v453_v55 = vadd.f32 %v377_v54, %v243_v51  ;;  %v379_v57 = vpop.f32.mrb[1].mxu0  ;;  %v1199_v51 = vld [vmem:[%s2050_s23 + $0x20] sm:$0xff] }
 0x169   : > { %v454_v58 = vadd.f32 %v379_v57, %v244_v52  ;;  %v448_v0 = vpop.f32.mrb[0].mxu1  ;;  %v1200_v52 = vld [vmem:[%s2050_s23 + $0x28] sm:$0xff] }
 0x16a   : > { %v1196_v60 = vmul.f32 -1.442695, %v453_v55  ;;  %v450_v2 = vpop.f32.mrb[1].mxu1  ;;  %v455_v3 = vadd.f32 %v448_v0, %v245_v62 }
 0x16b   : > { %v1197_v61 = vmul.f32 -1.442695, %v454_v58  ;;  %v456_v12 = vadd.f32 %v450_v2, %v246_v5  ;;  %v1201_v2 = vld [vmem:[%s2050_s23 + $0x30] sm:$0xff]  ;;  %v1202_v5 = vld [vmem:[%s2050_s23 + $0x38] sm:$0xff] }
 0x16c   : > { %1636 = vpow2.f32 %v1196_v60  ;;  %v1198_v6 = vmul.f32 -1.442695, %v455_v3 }
 0x16d   : > { %1638 = vpow2.f32 %v1197_v61 }
 0x16e   : > { %1640 = vpow2.f32 %v1198_v6 }
 0x16f   : > { %1642 = vtanh.f32 %v456_v12 }
 0x176   : > { %v1637_v13 = vpop.eup %1636 }
 0x177   : > { %v1639_v14 = vpop.eup %1638  ;;  %v466_v17 = vadd.f32 1.0, %v1637_v13 }
 0x178   : > { %v467_v20 = vadd.f32 1.0, %v1639_v14  ;;  %v1641_v21 = vpop.eup %1640 }
 0x179   : > { %1644 = vrcp.f32 %v466_v17  ;;  %v1643_v22 = vpop.eup %1642  ;;  %v468_v30 = vadd.f32 1.0, %v1641_v21 }
 0x17a   : > { %1646 = vrcp.f32 %v467_v20 }
 0x17b   : > { %1648 = vrcp.f32 %v468_v30 }
 0x183   : > { %v1645_v29 = vpop.eup %1644 }
 0x184   : > { %v1647_v35 = vpop.eup %1646  ;;  %v477_v36 = vmul.f32 %v1645_v29, %v1643_v22 }
 0x185   : > { %v476_v37 = vmul.f32 %v1647_v35, %v242_v24  ;;  %v1649_v44 = vpop.eup %1648 }
 0x187   : > { %v2200_v39 = vadd.f32 %v477_v36, %v476_v37 }
 0x189   : > { %1650 = vtanh.f32 %v2200_v39 }
 0x193   : > { %v1651_v45 = vpop.eup %1650 }
 0x194   : > { %v480_v48 = vmul.f32 %v1651_v45, %v1649_v44 }
 0x196   : > { %551 = vmatmul.mubr.f32.vlgmr.msra.gmra.mrb[2].mxu0 %v480_v48  ;;  %622 = vmatmul.mubr.f32.vlgmr.msra.gmra.mrb[2].mxu1 %v480_v48 }
 0x197   : > { %1411 = vmatpush1.bf16.msra.mxu0 %v2066_v9  ;;  %1443 = vmatpush1.bf16.msra.mxu1 %v2079_v26 }
 0x198   : > { %1413 = vmatprep.subr.bf16.mxu0 %v2068_v10  ;;  %1445 = vmatprep.subr.bf16.mxu1 %v2089_v34 }
 0x199   : > { %725 = vmatprep.mubr.f32.mxu0 %v1864_v8  ;;  %796 = vmatprep.mubr.f32.mxu1 %v1864_v8 }
 0x19b   : > { %1415 = vmatpush1.bf16.msra.mxu0 %v2072_v15  ;;  %1447 = vmatpush1.bf16.msra.mxu1 %v2091_v38 }
 0x19c   : > { %1417 = vmatprep.subr.bf16.mxu0 %v2075_v18  ;;  %1449 = vmatprep.subr.bf16.mxu1 %v2097_v46 }
 0x19f   : > { %1419 = vmatpush1.bf16.msra.mxu0 %v2082_v27  ;;  %1451 = vmatpush1.bf16.msra.mxu1 %v2103_v49 }
 0x1a0   : > { %1421 = vmatprep.subr.bf16.mxu0 %v2086_v31  ;;  %1453 = vmatprep.subr.bf16.mxu1 %v2106_v53 }
 0x1a3   : > { %1423 = vmatpush1.bf16.msra.mxu0 %v2095_v43  ;;  %1455 = vmatpush1.bf16.msra.mxu1 %v2115_v63 }
 0x1a4   : > { %1425 = vmatprep.subr.bf16.mxu0 %v2100_v47  ;;  %1457 = vmatprep.subr.bf16.mxu1 %v2118_v1 }
 0x1a7   : > { %1427 = vmatpush1.bf16.msra.mxu0 %v2109_v56  ;;  %1459 = vmatpush1.bf16.msra.mxu1 %v2127_v16 }
 0x1a8   : > { %1429 = vmatprep.subr.bf16.mxu0 %v2112_v59  ;;  %1461 = vmatprep.subr.bf16.mxu1 %v2130_v19 }
 0x1ab   : > { %1431 = vmatpush1.bf16.msra.mxu0 %v2121_v7  ;;  %1463 = vmatpush1.bf16.msra.mxu1 %v2139_v32 }
 0x1ac   : > { %1433 = vmatprep.subr.bf16.mxu0 %v2124_v11  ;;  %1465 = vmatprep.subr.bf16.mxu1 %v2142_v33 }
 0x1af   : > { %1435 = vmatpush1.bf16.msra.mxu0 %v2133_v25  ;;  %1467 = vmatpush1.bf16.msra.mxu1 %v2149_v41 }
 0x1b0   : > { %1437 = vmatprep.subr.bf16.mxu0 %v2136_v28  ;;  %1469 = vmatprep.subr.bf16.mxu1 %v2152_v42 }
 0x1b3   : > { %1439 = vmatpush1.bf16.msra.mxu0 %v2145_v40  ;;  %1471 = vmatpush1.bf16.msra.mxu1 %v2156_v50 }
 0x1b4   : > { %1473 = vmatprep.subr.bf16.mxu0 %v2062_v4  ;;  %1505 = vmatprep.subr.bf16.mxu1 %v2077_v23 }
 0x269   : > { %v552_v54 = vpop.f32.mrb[2].mxu0  ;;  %v623_v55 = vpop.f32.mrb[2].mxu1 }
 0x26a   : > { %v628_v57 = vadd.f32 %v1199_v51, %v552_v54  ;;  %v554_v58 = vpop.f32.mrb[3].mxu0  ;;  %v625_v60 = vpop.f32.mrb[3].mxu1  ;;  %v630_v3 = vadd.f32 %v1201_v2, %v623_v55 }
 0x26b   : > { %v629_v61 = vadd.f32 %v1200_v52, %v554_v58  ;;  %v631_v6 = vadd.f32 %v1202_v5, %v625_v60  ;;  %v1215_v60 = vld [vmem:[%s2050_s23 + $0x70] sm:$0xff] }
 0x26c   : > { %v1203_v62 = vmul.f32 -1.442695, %v628_v57  ;;  %v1205_v4 = vmul.f32 -1.442695, %v630_v3 }
 0x26d   : > { %v1204_v0 = vmul.f32 -1.442695, %v629_v61 }
 0x26e   : > { %1652 = vpow2.f32 %v1203_v62  ;;  %v1216_v62 = vld [vmem:[%s2050_s23 + $0x78] sm:$0xff] }
 0x26f   : > { %1654 = vpow2.f32 %v1204_v0 }
 0x270   : > { %1656 = vtanh.f32 %v631_v6 }
 0x271   : > { %1658 = vpow2.f32 %v1205_v4 }
 0x278   : > { %v1653_v12 = vpop.eup %1652 }
 0x279   : > { %v641_v13 = vadd.f32 1.0, %v1653_v12  ;;  %v1655_v23 = vpop.eup %1654 }
 0x27a   : > { %v642_v14 = vadd.f32 1.0, %v1655_v23  ;;  %v1657_v17 = vpop.eup %1656 }
 0x27b   : > { %1660 = vrcp.f32 %v641_v13  ;;  %v1659_v20 = vpop.eup %1658 }
 0x27c   : > { %1662 = vrcp.f32 %v642_v14  ;;  %v643_v29 = vadd.f32 1.0, %v1659_v20 }
 0x27e   : > { %1664 = vrcp.f32 %v643_v29 }
 0x285   : > { %v1661_v21 = vpop.eup %1660 }
 0x286   : > { %v652_v22 = vmul.f32 %v1661_v21, %v1657_v17  ;;  %v1663_v24 = vpop.eup %1662 }
 0x287   : > { %v651_v30 = vmul.f32 %v1663_v24, %v2200_v39  ;;  %v1214_v39 = vld [vmem:[%s2050_s23 + $0x68] sm:$0xff] }
 0x288   : > { %v1665_v36 = vpop.eup %1664 }
 0x289   : > { %v2242_v35 = vadd.f32 %v652_v22, %v651_v30 }
 0x28b   : > { %1666 = vtanh.f32 %v2242_v35 }
 0x295   : > { %v1667_v37 = vpop.eup %1666 }
 0x296   : > { %v655_v44 = vmul.f32 %v1667_v37, %v1665_v36  ;;  %v1013_v36 = vld [vmem:[#allocation9 + $0x8] sm:$0xff] (!%p1220_p10)  ;;  %v1014_v37 = vld [vmem:[#allocation9 + $0x10] sm:$0xff] (!%p1220_p10) }
 0x298   : > { %726 = vmatmul.mubr.f32.vlgmr.msra.gmra.mrb[4].mxu0 %v655_v44  ;;  %797 = vmatmul.mubr.f32.vlgmr.msra.gmra.mrb[4].mxu1 %v655_v44  ;;  %v1865_v44 = vmov (!%p1220_p10), 0.0|0.0  }
 0x299   : > { %1475 = vmatpush1.bf16.msra.mxu0 %v2066_v9  ;;  %1507 = vmatpush1.bf16.msra.mxu1 %v2079_v26  ;;  %v1207_v9 = vld [vmem:[%s2050_s23 + $0x48] sm:$0xff] }
 0x29a   : > { %1477 = vmatprep.subr.bf16.mxu0 %v2068_v10  ;;  %1509 = vmatprep.subr.bf16.mxu1 %v2089_v34 }
 0x29b   : > { %900 = vmatprep.mubr.f32.mxu0 %v1864_v8  ;;  %971 = vmatprep.mubr.f32.mxu1 %v1864_v8  ;;  %v1206_v8 = vld [vmem:[%s2050_s23 + $0x40] sm:$0xff] }
 0x29d   : > { %1479 = vmatpush1.bf16.msra.mxu0 %v2072_v15  ;;  %1511 = vmatpush1.bf16.msra.mxu1 %v2091_v38 }
 0x29e   : > { %1481 = vmatprep.subr.bf16.mxu0 %v2075_v18  ;;  %1513 = vmatprep.subr.bf16.mxu1 %v2097_v46 }
 0x2a1   : > { %1483 = vmatpush1.bf16.msra.mxu0 %v2082_v27  ;;  %1515 = vmatpush1.bf16.msra.mxu1 %v2103_v49 }
 0x2a2   : > { %1485 = vmatprep.subr.bf16.mxu0 %v2086_v31  ;;  %1517 = vmatprep.subr.bf16.mxu1 %v2106_v53 }
 0x2a5   : > { %1487 = vmatpush1.bf16.msra.mxu0 %v2095_v43  ;;  %1519 = vmatpush1.bf16.msra.mxu1 %v2115_v63  ;;  %v1208_v43 = vld [vmem:[%s2050_s23 + $0x50] sm:$0xff] }
 0x2a6   : > { %1489 = vmatprep.subr.bf16.mxu0 %v2100_v47  ;;  %1521 = vmatprep.subr.bf16.mxu1 %v2118_v1  ;;  %v1209_v47 = vld [vmem:[%s2050_s23 + $0x58] sm:$0xff] }
 0x2a9   : > { %1491 = vmatpush1.bf16.msra.mxu0 %v2109_v56  ;;  %1523 = vmatpush1.bf16.msra.mxu1 %v2127_v16 }
 0x2aa   : > { %1493 = vmatprep.subr.bf16.mxu0 %v2112_v59  ;;  %1525 = vmatprep.subr.bf16.mxu1 %v2130_v19 }
 0x2ad   : > { %1495 = vmatpush1.bf16.msra.mxu0 %v2121_v7  ;;  %1527 = vmatpush1.bf16.msra.mxu1 %v2139_v32 }
 0x2ae   : > { %1497 = vmatprep.subr.bf16.mxu0 %v2124_v11  ;;  %1529 = vmatprep.subr.bf16.mxu1 %v2142_v33 }
 0x2b1   : > { %1499 = vmatpush1.bf16.msra.mxu0 %v2133_v25  ;;  %1531 = vmatpush1.bf16.msra.mxu1 %v2149_v41 }
 0x2b2   : > { %1501 = vmatprep.subr.bf16.mxu0 %v2136_v28  ;;  %1533 = vmatprep.subr.bf16.mxu1 %v2152_v42 }
 0x2b5   : > { %1503 = vmatpush1.bf16.msra.mxu0 %v2145_v40  ;;  %1535 = vmatpush1.bf16.msra.mxu1 %v2156_v50  ;;  %v1213_v50 = vld [vmem:[%s2050_s23 + $0x60] sm:$0xff] }
 0x2b6   : > { %1536 = vmatprep.subr.bf16.mxu0 (!%p1220_p10), %v1865_v44 }
 0x36b   : > { %v727_v10 = vpop.f32.mrb[4].mxu0  ;;  %v798_v15 = vpop.f32.mrb[4].mxu1 }
 0x36c   : > { %v803_v18 = vadd.f32 %v1206_v8, %v727_v10  ;;  %v729_v26 = vpop.f32.mrb[5].mxu0  ;;  %v800_v27 = vpop.f32.mrb[5].mxu1  ;;  %v805_v46 = vadd.f32 %v1208_v43, %v798_v15  ;;  %v1867_v10 = vmov (!%p1220_p10), 0.0   ;;  %v1020_v43 = vld [vmem:[#allocation9 + $0x40] sm:$0xff] (!%p1220_p10) }
 0x36d   : > { %v804_v31 = vadd.f32 %v1207_v9, %v729_v26  ;;  %v806_v49 = vadd.f32 %v1209_v47, %v800_v27  ;;  %v1015_v9 = vld [vmem:[#allocation9 + $0x18] sm:$0xff] (!%p1220_p10)  ;;  %v1017_v26 = vld [vmem:[#allocation9 + $0x28] sm:$0xff] (!%p1220_p10) }
 0x36e   : > { %v1210_v34 = vmul.f32 -1.442695, %v803_v18  ;;  %v1212_v53 = vmul.f32 -1.442695, %v805_v46  ;;  %v1540_v15 = vpack.c.bf16 (!%p1220_p10), %v1015_v9, %v1014_v37  ;;  %v1016_v18 = vld [vmem:[#allocation9 + $0x20] sm:$0xff] (!%p1220_p10)  ;;  %v1021_v46 = vld [vmem:[#allocation9 + $0x48] sm:$0xff] (!%p1220_p10) }
 0x36f   : > { %v1211_v38 = vmul.f32 -1.442695, %v804_v31  ;;  %v1543_v27 = vpack.c.bf16 (!%p1220_p10), %v1017_v26, %v1016_v18  ;;  %v1018_v31 = vld [vmem:[#allocation9 + $0x30] sm:$0xff] (!%p1220_p10)  ;;  %v1549_v47 = vpack.c.bf16 (!%p1220_p10), %v1021_v46, %v1020_v43 }
 0x370   : > { %1668 = vpow2.f32 %v1210_v34  ;;  %v1019_v34 = vld [vmem:[#allocation9 + $0x38] sm:$0xff] (!%p1220_p10) }
 0x371   : > { %1670 = vpow2.f32 %v1211_v38  ;;  %v1546_v38 = vpack.c.bf16 (!%p1220_p10), %v1019_v34, %v1018_v31 }
 0x372   : > { %1672 = vtanh.f32 %v806_v49  ;;  %v1022_v49 = vld [vmem:[#allocation9 + $0x50] sm:$0xff] (!%p1220_p10) }
 0x373   : > { %1674 = vpow2.f32 %v1212_v53  ;;  %v1023_v53 = vld [vmem:[#allocation9 + $0x58] sm:$0xff] (!%p1220_p10) }
 0x37a   : > { %v1669_v56 = vpop.eup %1668 }
 0x37b   : > { %v816_v59 = vadd.f32 1.0, %v1669_v56  ;;  %v1671_v63 = vpop.eup %1670  ;;  %v1552_v56 = vpack.c.bf16 (!%p1220_p10), %v1023_v53, %v1022_v49 }
 0x37c   : > { %v817_v1 = vadd.f32 1.0, %v1671_v63  ;;  %v1673_v7 = vpop.eup %1672  ;;  %v1025_v63 = vld [vmem:[#allocation9 + $0x68] sm:$0xff] (!%p1220_p10) }
 0x37d   : > { %1676 = vrcp.f32 %v816_v59  ;;  %v1675_v11 = vpop.eup %1674  ;;  %v1024_v59 = vld [vmem:[#allocation9 + $0x60] sm:$0xff] (!%p1220_p10) }
 0x37e   : > { %1678 = vrcp.f32 %v817_v1  ;;  %v818_v28 = vadd.f32 1.0, %v1675_v11  ;;  %v1555_v1 = vpack.c.bf16 (!%p1220_p10), %v1025_v63, %v1024_v59  ;;  %v1027_v11 = vld [vmem:[#allocation9 + $0x78] sm:$0xff] (!%p1220_p10) }
 0x380   : > { %1680 = vrcp.f32 %v818_v28 }
 0x387   : > { %v1677_v16 = vpop.eup %1676 }
 0x388   : > { %v827_v19 = vmul.f32 %v1677_v16, %v1673_v7  ;;  %v1679_v25 = vpop.eup %1678  ;;  %v1026_v7 = vld [vmem:[#allocation9 + $0x70] sm:$0xff] (!%p1220_p10) }
 0x389   : > { %v826_v32 = vmul.f32 %v1679_v25, %v2242_v35  ;;  %v1012_v35 = vld [vmem:[#allocation9] sm:$0xff] (!%p1220_p10)  ;;  %v1558_v16 = vpack.c.bf16 (!%p1220_p10), %v1027_v11, %v1026_v7 }
 0x38a   : > { %v1681_v40 = vpop.eup %1680  ;;  %v1537_v8 = vpack.c.bf16 (!%p1220_p10), %v1013_v36, %v1012_v35 }
 0x38b   : > { %v828_v33 = vadd.f32 %v827_v19, %v826_v32  ;;  %v1221_v19 = vld [vmem:[%s2329_s3] ss:$0 sm:$0xff] (!%p1220_p10) }
 0x38d   : > { %1682 = vtanh.f32 %v828_v33 }
 0x397   : > { %v1683_v41 = vpop.eup %1682 }
 0x398   : > { %v830_v42 = vmul.f32 %v1683_v41, %v1681_v40 }
 0x39a   : > { %901 = vmatmul.mubr.f32.vlgmr.msra.gmra.mrb[6].mxu0 %v830_v42  ;;  %972 = vmatmul.mubr.f32.vlgmr.msra.gmra.mrb[6].mxu1 %v830_v42 }
 0x39b   : > { %1277 = vmatprep.mubr.msk.f32.mxu0 (!%p1220_p10), %vm1866_vm0, %v1867_v10  ;;  %1538 = vmatpush3.bf16.msra.mxu0 (!%p1220_p10), %v1537_v8 }
 0x39c   : > { %1539 = vmatprep.subr.bf16.mxu0 (!%p1220_p10), %v1865_v44 }
 0x39f   : > { %1541 = vmatpush3.bf16.msra.mxu0 (!%p1220_p10), %v1540_v15 }
 0x3a0   : > { %1542 = vmatprep.subr.bf16.mxu0 (!%p1220_p10), %v1865_v44 }
 0x3a3   : > { %1544 = vmatpush3.bf16.msra.mxu0 (!%p1220_p10), %v1543_v27 }
 0x3a4   : > { %1545 = vmatprep.subr.bf16.mxu0 (!%p1220_p10), %v1865_v44 }
 0x3a7   : > { %1547 = vmatpush3.bf16.msra.mxu0 (!%p1220_p10), %v1546_v38 }
 0x3a8   : > { %1548 = vmatprep.subr.bf16.mxu0 (!%p1220_p10), %v1865_v44 }
 0x3ab   : > { %1550 = vmatpush3.bf16.msra.mxu0 (!%p1220_p10), %v1549_v47 }
 0x3ac   : > { %1551 = vmatprep.subr.bf16.mxu0 (!%p1220_p10), %v1865_v44 }
 0x3af   : > { %1553 = vmatpush3.bf16.msra.mxu0 (!%p1220_p10), %v1552_v56 }
 0x3b0   : > { %1554 = vmatprep.subr.bf16.mxu0 (!%p1220_p10), %v1865_v44 }
 0x3b3   : > { %1556 = vmatpush3.bf16.msra.mxu0 (!%p1220_p10), %v1555_v1 }
 0x3b4   : > { %1557 = vmatprep.subr.bf16.mxu0 (!%p1220_p10), %v1865_v44 }
 0x3b7   : > { %1559 = vmatpush3.bf16.msra.mxu0 (!%p1220_p10), %v1558_v16 }
 0x46d   : > { %v902_v45 = vpop.f32.mrb[6].mxu0  ;;  %v973_v48 = vpop.f32.mrb[6].mxu1 }
 0x46e   : > { %v978_v51 = vadd.f32 %v1213_v50, %v902_v45  ;;  %v904_v52 = vpop.f32.mrb[7].mxu0  ;;  %v975_v54 = vpop.f32.mrb[7].mxu1  ;;  %v980_v61 = vadd.f32 %v1215_v60, %v973_v48 }
 0x46f   : > { %v979_v55 = vadd.f32 %v1214_v39, %v904_v52  ;;  %v981_v0 = vadd.f32 %v1216_v62, %v975_v54 }
 0x470   : > { %v1217_v57 = vmul.f32 -1.442695, %v978_v51  ;;  %v1219_v2 = vmul.f32 -1.442695, %v980_v61 }
 0x471   : > { %v1218_v58 = vmul.f32 -1.442695, %v979_v55 }
 0x472   : > { %1684 = vpow2.f32 %v1217_v57 }
 0x473   : > { %1686 = vpow2.f32 %v1218_v58 }
 0x474   : > { %1688 = vtanh.f32 %v981_v0 }
 0x475   : > { %1690 = vpow2.f32 %v1219_v2 }
 0x47c   : > { %v1685_v3 = vpop.eup %1684 }
 0x47d   : > { %v991_v5 = vadd.f32 1.0, %v1685_v3  ;;  %v1687_v6 = vpop.eup %1686 }
 0x47e   : > { %v992_v4 = vadd.f32 1.0, %v1687_v6  ;;  %v1689_v12 = vpop.eup %1688 }
 0x47f   : > { %1692 = vrcp.f32 %v991_v5  ;;  %v1691_v13 = vpop.eup %1690 }
 0x480   : > { %1694 = vrcp.f32 %v992_v4  ;;  %v993_v20 = vadd.f32 1.0, %v1691_v13 }
 0x482   : > { %1696 = vrcp.f32 %v993_v20 }
 0x489   : > { %v1693_v23 = vpop.eup %1692 }
 0x48a   : > { %v1002_v14 = vmul.f32 %v1693_v23, %v1689_v12  ;;  %v1695_v17 = vpop.eup %1694 }
 0x48b   : > { %v1001_v21 = vmul.f32 %v1695_v17, %v828_v33 }
 0x48c   : > { %v1697_v24 = vpop.eup %1696 }
 0x48d   : > { %v1003_v22 = vadd.f32 %v1002_v14, %v1001_v21 }
 0x48f   : > { %1698 = vtanh.f32 %v1003_v22  ;;  %1007 = vst [vmem:[#allocation3] sm:$0xff] %v1003_v22 }
 0x496   : > { %1011 = sbr.rel (%p1220_p10) target bundleno = 1395 (0x573), region = 56 }
 0x499   : > { %v1699_v29 = vpop.eup %1698 }
 0x49a   : > { %v1005_v30 = vmul.f32 %v1699_v29, %v1697_v24 }
 0x49c   : > { %1006 = vst [vmem:[#allocation2] sm:$0xff] %v1005_v30  ;;  %1278 = vmatmul.mubr.f32.vlgmr.msra.gmra.mrb[0].mxu0 (!%p1220_p10), %v1005_v30 }
 0x56f   : > { %v1101_v25 = vpop.f32.mrb[0].mxu0 }
 0x570   : > { %v1102_v28 = vadd.f32 %v1221_v19, %v1101_v25  ;;  %v1279_v32 = vpop.f32.mrb[1].mxu0 }
 0x572   : > { %1105 = vst [vmem:[#allocation10] sm:$0xff] %v1102_v28 }
 0x573 PF: > { %p1590_p1 = scmp.eq.s32.totalorder %s1913_s19, 1  ;;  %s1868_s9 = smov [#allocation10]  }
 0x574   : > { %s1113_s10 = sshll.u32 %s1868_s9, 4  ;;  %s1114_s10 = int_to_ptr.vmem [resolvable:$true] %s1113_s10 }
 0x575   : > { %s1786_s25 = scalar_lea.vmem %s1114_s10, 128  ;;  %p1793_p9 = scmp.lt.s32.totalorder %s1114_s10, %s1114_s10 }
 0x576   : > { %p1787_p4 = scmp.ne.s32.totalorder %s1114_s10, %s1786_s25  ;;  %p1794_p12 = scmp.lt.s32.totalorder %s1786_s25, %s1786_s25 }
 0x578   : > { %p1788_p5 = pnand %p1787_p4, %p1590_p1  ;;  %p1795_p0 = por %p1794_p12, %p1793_p9 }
 0x57a   : > { %p1789_p6 = pneg %p1788_p5 }
 0x57c   : > { %p1796_p2 = pnand %p1795_p0, %p1789_p6 }
 0x57e   : > { %1799 = shalt.err (!%p1796_p2)
}
 0x57f   : > { %s1800_s18 = scalar_lea.hbm %s2330_s4, 128 }
 0x580   : > { %p1801_p11 = scmp.ne.s32.totalorder %s2330_s4, %s1800_s18  ;;  %p1806_p8 = scmp.lt.u32.totalorder %s1800_s18, %s2330_s4 }
 0x582   : > { %p1802_p13 = pnand %p1801_p11, %p1590_p1 }
 0x584   : > { %p1803_p3 = pneg %p1802_p13 }
 0x586   : > { %p1808_p7 = pnand %p1806_p8, %p1803_p3 }
 0x588   : > { %1811 = shalt.err (!%p1808_p7)
}
 0x589   : > { %1571 = dma.vmem_to_hbm [thread:$0]  (%p1590_p1), %s1114_s10, 128, %s2330_s4, [#allocation6]  }
 0x58a   : > { %1837 = dma.done.wait (%p1590_p1), [#allocation6], 128  }
 0x58b   : > { %1839 = vsyncadd (%p1590_p1), [#allocation6], 4294967168 }
 0x58c PF: > { %p16_p10 = scmp.ge.s32.totalorder %s1991_s7, 4   ;;  %s2343_s15 = smov %s1846_s16 }
 0x58d   : > { %s2344_s16 = smov %s1850_s17  ;;  %s2345_s17 = smov %s2000_s12 }
 0x58e   : > { %s2346_s18 = smov %s1991_s7  ;;  %18 = sbr.rel (!%p16_p10) target bundleno = 5 (0x5), region = 92 }
 0x595   :  { %1126 = vsyncpa [#allocation5], 1 }
 0x596   :  { %1128 = vsyncpa [#allocation5 + $0x1], 1 }
 0x597   :  { %1129 = vsyncpa [#allocation8], 1 }
 0x598   :  { %1130 = vsyncpa [#allocation6], 1 }
 0x599   :  { %1132 = vsyncpa [#allocation6 + $0x1], 1 }

</bundles_post_ra>
